<compile_context>
chip_gen: v6e
topology: v6e:2x2x1
jax: 0.10.0
libtpu: 0.0.40
codegen_flags: <defaults>
</compile_context>

<pallas_src>
import functools

import jax
import jax.numpy as jnp
from jax import lax
from jax.experimental import pallas as pl
from jax.experimental.pallas import tpu as pltpu


def _round_up(v, m):
    return ((v + m - 1) // m) * m


# ----------------------------- Pallas kernel ------------------------------ #
def _make_conv_bn_prelu_kernel(cin, kh, kw, wp, k, k_pad, p_blk):
    khw = kh * kw

    def kernel(sig_ref, w_ref, shift_ref, alpha_ref, o_ref, patch_ref):
        # sig_ref:   (1, 1, CIN, S_PAD) row-flattened padded input slab (VMEM)
        # w_ref:     (COUT, K_PAD)      conv weights with BN scale folded in
        # shift_ref: (COUT, 1)          folded BN/bias shift
        # alpha_ref: (1, 1)             PReLU slope, SMEM scalar
        # o_ref:     (1, COUT, P_BLK)   output block (lane-dense)
        # patch_ref: (K_PAD, P_BLK)     VMEM scratch: im2col tile built here
        for c in range(cin):
            for ki in range(kh):
                for kj in range(kw):
                    row = c * khw + ki * kw + kj
                    off = ki * wp + kj            # static shift into the slab
                    patch_ref[row:row + 1, :] = sig_ref[0, 0, c:c + 1,
                                                        off:off + p_blk]
        if k_pad > k:
            # keep padded contraction rows exact zeros (matching zero weights)
            patch_ref[k:, :] = jnp.zeros((k_pad - k, p_blk), jnp.float32)

        z = jnp.dot(w_ref[...], patch_ref[...],
                    preferred_element_type=jnp.float32)       # (COUT, P_BLK)
        y = z + shift_ref[...]                                # (COUT,1) bcast
        alpha = alpha_ref[0, 0]
        o_ref[0] = jnp.where(y >= 0.0, y, alpha * y)

    return kernel


# ------------------------------- wrapper ----------------------------------- #
@functools.partial(jax.jit, static_argnames=("kernel", "padding"))
def basic_block_forward(x, params, kernel=(3, 7), padding=(1, 3)):
    """x: [N, Cin, H, W] (NCHW, like PyTorch). Returns [N, Cout, H, W]."""
    kh, kw = kernel
    ph, pw = padding
    n, cin, h, w = x.shape
    cout = params["conv_w"].shape[0]
    eps = 1e-5

    wp = w + 2 * pw                       # padded width
    k = cin * kh * kw                     # contraction depth (21 for defaults)
    k_pad = _round_up(k, 8)

    # Row tiling: each grid step computes TR output rows over all Wp columns
    # (the last 2*pw columns per row are garbage and sliced away afterwards).
    target_cols = 512                     # ~roofline knee for the M tile
    tile_rows = max(1, min(h, target_cols // wp))
    num_tiles = pl.cdiv(h, tile_rows)
    p_tile = tile_rows * wp               # real columns per tile
    p_blk = _round_up(max(p_tile, 128), 128)   # lane-dense output block
    slab_rows = tile_rows + kh - 1
    s_pad = _round_up(max(p_blk + (kh - 1) * wp + (kw - 1),
                          slab_rows * wp), 128)

    # ---- fold conv bias + BN (inference) into weights / per-channel shift --
    scale = params["bn_gamma"] / jnp.sqrt(params["bn_var"] + eps)      # (COUT,)
    shift = params["bn_beta"] + scale * (params["conv_b"] - params["bn_mean"])
    w_fold = params["conv_w"].reshape(cout, k) * scale[:, None]        # (COUT,K)
    w_fold = jnp.pad(w_fold, ((0, 0), (0, k_pad - k)))                 # (COUT,K_PAD)
    shift = shift.reshape(cout, 1)
    alpha = jnp.reshape(params["prelu_alpha"].astype(jnp.float32), (1, 1))

    # ---- build per-(sample, row-tile) row-flattened padded input slabs -----
    hp_total = num_tiles * tile_rows + kh - 1
    xpad = jnp.pad(x, ((0, 0), (0, 0), (ph, hp_total - h - ph), (pw, pw)))
    slabs = jnp.stack(
        [xpad[:, :, t0 * tile_rows: t0 * tile_rows + slab_rows, :]
         for t0 in range(num_tiles)], axis=1)          # (N, T, CIN, slab_rows, WP)
    slabs = slabs.reshape(n, num_tiles, cin, slab_rows * wp)
    slabs = jnp.pad(slabs, ((0, 0), (0, 0), (0, 0),
                            (0, s_pad - slab_rows * wp)))

    grid_spec = pltpu.PrefetchScalarGridSpec(
        num_scalar_prefetch=0,
        grid=(n, num_tiles),
        in_specs=[
            pl.BlockSpec((1, 1, cin, s_pad), lambda ni, ti: (ni, ti, 0, 0)),
            pl.BlockSpec((cout, k_pad), lambda ni, ti: (0, 0)),
            pl.BlockSpec((cout, 1), lambda ni, ti: (0, 0)),
            pl.BlockSpec(memory_space=pltpu.MemorySpace.SMEM),
        ],
        out_specs=pl.BlockSpec((1, cout, p_blk), lambda ni, ti: (ni, 0, ti)),
        scratch_shapes=[pltpu.VMEM((k_pad, p_blk), jnp.float32)],
    )

    out_wide = pl.pallas_call(
        _make_conv_bn_prelu_kernel(cin, kh, kw, wp, k, k_pad, p_blk),
        out_shape=jax.ShapeDtypeStruct((n, cout, num_tiles * p_blk), jnp.float32),
        grid_spec=grid_spec,
        compiler_params=pltpu.CompilerParams(
            dimension_semantics=("parallel", "parallel")),
    )(slabs, w_fold, shift, alpha)

    # [N, COUT, T*P_BLK] -> drop block padding / garbage columns -> NCHW.
    out = out_wide.reshape(n, cout, num_tiles, p_blk)[:, :, :, :p_tile]
    out = out.reshape(n, cout, num_tiles * tile_rows, wp)[:, :, :h, :w]
    # TODO(synk): Dropout2d(p=0.3) is identity in inference mode; training-mode
    # channel dropout (with PyTorch-matching RNG) is not reproduced here.
    return out


# ------------------------------ reference ---------------------------------- #
def _reference(x, params, kernel=(3, 7), padding=(1, 3)):
    """Pure-JAX reference (lax.conv) for correctness checking."""
    ph, pw = padding
    eps = 1e-5
    z = lax.conv_general_dilated(
        x, params["conv_w"], window_strides=(1, 1),
        padding=((ph, ph), (pw, pw)),
        dimension_numbers=("NCHW", "OIHW", "NCHW"))
    z = z + params["conv_b"][None, :, None, None]
    scale = params["bn_gamma"] / jnp.sqrt(params["bn_var"] + eps)
    y = (z - params["bn_mean"][None, :, None, None]) * scale[None, :, None, None] \
        + params["bn_beta"][None, :, None, None]
    return jnp.where(y >= 0.0, y, params["prelu_alpha"] * y)


def _init_params(key, cin=1, cout=64, kernel=(3, 7)):
    kh, kw = kernel
    k0, k1, k2, k3, k4, k5 = jax.random.split(key, 6)
    return {
        "conv_w": 0.1 * jax.random.normal(k0, (cout, cin, kh, kw), jnp.float32),
        "conv_b": 0.1 * jax.random.normal(k1, (cout,), jnp.float32),
        "bn_gamma": 1.0 + 0.05 * jax.random.normal(k2, (cout,), jnp.float32),
        "bn_beta": 0.05 * jax.random.normal(k3, (cout,), jnp.float32),
        "bn_mean": 0.1 * jax.random.normal(k4, (cout,), jnp.float32),
        "bn_var": 1.0 + 0.1 * jnp.abs(jax.random.normal(k5, (cout,), jnp.float32)),
        "prelu_alpha": jnp.float32(0.25),
    }


if __name__ == "__main__":
    key = jax.random.PRNGKey(0)
    pkey, xkey = jax.random.split(key)

    # Small NCHW input consistent with the module defaults (Cin=1, Cout=64).
    N, CIN, H, W = 2, 1, 16, 16
    x = jax.random.normal(xkey, (N, CIN, H, W), jnp.float32)
    params = _init_params(pkey, cin=CIN, cout=64, kernel=(3, 7))

    out = basic_block_forward(x, params)
    out = jax.block_until_ready(out)

    ref = _reference(x, params)
    assert out.shape == (N, 64, H, W), out.shape
    assert jnp.allclose(out, ref, atol=1e-4, rtol=1e-4), \
        float(jnp.max(jnp.abs(out - ref)))

    print("KERNEL_OK")
</pallas_src>

<mosaic_0001>
module attributes {stable_mosaic.version = 11 : i64} {
  func.func @kernel(%arg0: i32, %arg1: i32, %arg2: memref<1x1x1x512xf32, #tpu.memory_space<vmem>>, %arg3: memref<64x24xf32, #tpu.memory_space<vmem>>, %arg4: memref<64x1xf32, #tpu.memory_space<vmem>>, %arg5: memref<1x1xf32, #tpu.memory_space<smem>>, %arg6: memref<1x64x384xf32, #tpu.memory_space<vmem>>, %arg7: memref<24x384xf32, #tpu.memory_space<vmem>>) attributes {dimension_semantics = [#tpu.dimension_semantics<parallel>, #tpu.dimension_semantics<parallel>], iteration_bounds = array<i64: 2, 1>, scalar_prefetch = 0 : i64, scratch_operands = 1 : i64, tpu.core_type = #tpu.core_type<tc>, window_params = [{transform_indices = @transform_0, window_bounds = array<i64: 1, 1, 1, 512>}, {pipeline_mode = #tpu.pipeline_mode<synchronous>, transform_indices = @transform_1, window_bounds = array<i64: 64, 24>}, {pipeline_mode = #tpu.pipeline_mode<synchronous>, transform_indices = @transform_2, window_bounds = array<i64: 64, 1>}, {transform_indices = @transform_3, window_bounds = array<i64: 1, 1>}, {transform_indices = @transform_4, window_bounds = array<i64: 1, 64, 384>}]} {
    %c0 = arith.constant 0 : index
    %c0_0 = arith.constant 0 : index
    %c0_1 = arith.constant 0 : index
    %c0_2 = arith.constant 0 : index
    %0 = vector.load %arg2[%c0, %c0_0, %c0_1, %c0_2] : memref<1x1x1x512xf32, #tpu.memory_space<vmem>>, vector<1x1x1x384xf32>
    %1 = vector.shape_cast %0 : vector<1x1x1x384xf32> to vector<1x384xf32>
    %c0_3 = arith.constant 0 : index
    %c0_4 = arith.constant 0 : index
    %2 = vector.load %arg7[%c0_3, %c0_4] : memref<24x384xf32, #tpu.memory_space<vmem>>, vector<1x384xf32>
    tpu.vector_store %arg7[%c0_3, %c0_4], %1 {strides = array<i32>} : memref<24x384xf32, #tpu.memory_space<vmem>>, vector<1x384xf32>,
    %c0_5 = arith.constant 0 : index
    %c0_6 = arith.constant 0 : index
    %c0_7 = arith.constant 0 : index
    %c1 = arith.constant 1 : index
    %3 = vector.load %arg2[%c0_5, %c0_6, %c0_7, %c1] : memref<1x1x1x512xf32, #tpu.memory_space<vmem>>, vector<1x1x1x384xf32>
    %4 = vector.shape_cast %3 : vector<1x1x1x384xf32> to vector<1x384xf32>
    %c1_8 = arith.constant 1 : index
    %c0_9 = arith.constant 0 : index
    %5 = vector.load %arg7[%c1_8, %c0_9] : memref<24x384xf32, #tpu.memory_space<vmem>>, vector<1x384xf32>
    tpu.vector_store %arg7[%c1_8, %c0_9], %4 {strides = array<i32>} : memref<24x384xf32, #tpu.memory_space<vmem>>, vector<1x384xf32>,
    %c0_10 = arith.constant 0 : index
    %c0_11 = arith.constant 0 : index
    %c0_12 = arith.constant 0 : index
    %c2 = arith.constant 2 : index
    %6 = vector.load %arg2[%c0_10, %c0_11, %c0_12, %c2] : memref<1x1x1x512xf32, #tpu.memory_space<vmem>>, vector<1x1x1x384xf32>
    %7 = vector.shape_cast %6 : vector<1x1x1x384xf32> to vector<1x384xf32>
    %c2_13 = arith.constant 2 : index
    %c0_14 = arith.constant 0 : index
    %8 = vector.load %arg7[%c2_13, %c0_14] : memref<24x384xf32, #tpu.memory_space<vmem>>, vector<1x384xf32>
    tpu.vector_store %arg7[%c2_13, %c0_14], %7 {strides = array<i32>} : memref<24x384xf32, #tpu.memory_space<vmem>>, vector<1x384xf32>,
    %c0_15 = arith.constant 0 : index
    %c0_16 = arith.constant 0 : index
    %c0_17 = arith.constant 0 : index
    %c3 = arith.constant 3 : index
    %9 = vector.load %arg2[%c0_15, %c0_16, %c0_17, %c3] : memref<1x1x1x512xf32, #tpu.memory_space<vmem>>, vector<1x1x1x384xf32>
    %10 = vector.shape_cast %9 : vector<1x1x1x384xf32> to vector<1x384xf32>
    %c3_18 = arith.constant 3 : index
    %c0_19 = arith.constant 0 : index
    %11 = vector.load %arg7[%c3_18, %c0_19] : memref<24x384xf32, #tpu.memory_space<vmem>>, vector<1x384xf32>
    tpu.vector_store %arg7[%c3_18, %c0_19], %10 {strides = array<i32>} : memref<24x384xf32, #tpu.memory_space<vmem>>, vector<1x384xf32>,
    %c0_20 = arith.constant 0 : index
    %c0_21 = arith.constant 0 : index
    %c0_22 = arith.constant 0 : index
    %c4 = arith.constant 4 : index
    %12 = vector.load %arg2[%c0_20, %c0_21, %c0_22, %c4] : memref<1x1x1x512xf32, #tpu.memory_space<vmem>>, vector<1x1x1x384xf32>
    %13 = vector.shape_cast %12 : vector<1x1x1x384xf32> to vector<1x384xf32>
    %c4_23 = arith.constant 4 : index
    %c0_24 = arith.constant 0 : index
    %14 = vector.load %arg7[%c4_23, %c0_24] : memref<24x384xf32, #tpu.memory_space<vmem>>, vector<1x384xf32>
    tpu.vector_store %arg7[%c4_23, %c0_24], %13 {strides = array<i32>} : memref<24x384xf32, #tpu.memory_space<vmem>>, vector<1x384xf32>,
    %c0_25 = arith.constant 0 : index
    %c0_26 = arith.constant 0 : index
    %c0_27 = arith.constant 0 : index
    %c5 = arith.constant 5 : index
    %15 = vector.load %arg2[%c0_25, %c0_26, %c0_27, %c5] : memref<1x1x1x512xf32, #tpu.memory_space<vmem>>, vector<1x1x1x384xf32>
    %16 = vector.shape_cast %15 : vector<1x1x1x384xf32> to vector<1x384xf32>
    %c5_28 = arith.constant 5 : index
    %c0_29 = arith.constant 0 : index
    %17 = vector.load %arg7[%c5_28, %c0_29] : memref<24x384xf32, #tpu.memory_space<vmem>>, vector<1x384xf32>
    tpu.vector_store %arg7[%c5_28, %c0_29], %16 {strides = array<i32>} : memref<24x384xf32, #tpu.memory_space<vmem>>, vector<1x384xf32>,
    %c0_30 = arith.constant 0 : index
    %c0_31 = arith.constant 0 : index
    %c0_32 = arith.constant 0 : index
    %c6 = arith.constant 6 : index
    %18 = vector.load %arg2[%c0_30, %c0_31, %c0_32, %c6] : memref<1x1x1x512xf32, #tpu.memory_space<vmem>>, vector<1x1x1x384xf32>
    %19 = vector.shape_cast %18 : vector<1x1x1x384xf32> to vector<1x384xf32>
    %c6_33 = arith.constant 6 : index
    %c0_34 = arith.constant 0 : index
    %20 = vector.load %arg7[%c6_33, %c0_34] : memref<24x384xf32, #tpu.memory_space<vmem>>, vector<1x384xf32>
    tpu.vector_store %arg7[%c6_33, %c0_34], %19 {strides = array<i32>} : memref<24x384xf32, #tpu.memory_space<vmem>>, vector<1x384xf32>,
    %c0_35 = arith.constant 0 : index
    %c0_36 = arith.constant 0 : index
    %c0_37 = arith.constant 0 : index
    %c22 = arith.constant 22 : index
    %21 = vector.load %arg2[%c0_35, %c0_36, %c0_37, %c22] : memref<1x1x1x512xf32, #tpu.memory_space<vmem>>, vector<1x1x1x384xf32>
    %22 = vector.shape_cast %21 : vector<1x1x1x384xf32> to vector<1x384xf32>
    %c7 = arith.constant 7 : index
    %c0_38 = arith.constant 0 : index
    %23 = vector.load %arg7[%c7, %c0_38] : memref<24x384xf32, #tpu.memory_space<vmem>>, vector<1x384xf32>
    tpu.vector_store %arg7[%c7, %c0_38], %22 {strides = array<i32>} : memref<24x384xf32, #tpu.memory_space<vmem>>, vector<1x384xf32>,
    %c0_39 = arith.constant 0 : index
    %c0_40 = arith.constant 0 : index
    %c0_41 = arith.constant 0 : index
    %c23 = arith.constant 23 : index
    %24 = vector.load %arg2[%c0_39, %c0_40, %c0_41, %c23] : memref<1x1x1x512xf32, #tpu.memory_space<vmem>>, vector<1x1x1x384xf32>
    %25 = vector.shape_cast %24 : vector<1x1x1x384xf32> to vector<1x384xf32>
    %c8 = arith.constant 8 : index
    %c0_42 = arith.constant 0 : index
    %26 = vector.load %arg7[%c8, %c0_42] : memref<24x384xf32, #tpu.memory_space<vmem>>, vector<1x384xf32>
    tpu.vector_store %arg7[%c8, %c0_42], %25 {strides = array<i32>} : memref<24x384xf32, #tpu.memory_space<vmem>>, vector<1x384xf32>,
    %c0_43 = arith.constant 0 : index
    %c0_44 = arith.constant 0 : index
    %c0_45 = arith.constant 0 : index
    %c24 = arith.constant 24 : index
    %27 = vector.load %arg2[%c0_43, %c0_44, %c0_45, %c24] : memref<1x1x1x512xf32, #tpu.memory_space<vmem>>, vector<1x1x1x384xf32>
    %28 = vector.shape_cast %27 : vector<1x1x1x384xf32> to vector<1x384xf32>
    %c9 = arith.constant 9 : index
    %c0_46 = arith.constant 0 : index
    %29 = vector.load %arg7[%c9, %c0_46] : memref<24x384xf32, #tpu.memory_space<vmem>>, vector<1x384xf32>
    tpu.vector_store %arg7[%c9, %c0_46], %28 {strides = array<i32>} : memref<24x384xf32, #tpu.memory_space<vmem>>, vector<1x384xf32>,
    %c0_47 = arith.constant 0 : index
    %c0_48 = arith.constant 0 : index
    %c0_49 = arith.constant 0 : index
    %c25 = arith.constant 25 : index
    %30 = vector.load %arg2[%c0_47, %c0_48, %c0_49, %c25] : memref<1x1x1x512xf32, #tpu.memory_space<vmem>>, vector<1x1x1x384xf32>
    %31 = vector.shape_cast %30 : vector<1x1x1x384xf32> to vector<1x384xf32>
    %c10 = arith.constant 10 : index
    %c0_50 = arith.constant 0 : index
    %32 = vector.load %arg7[%c10, %c0_50] : memref<24x384xf32, #tpu.memory_space<vmem>>, vector<1x384xf32>
    tpu.vector_store %arg7[%c10, %c0_50], %31 {strides = array<i32>} : memref<24x384xf32, #tpu.memory_space<vmem>>, vector<1x384xf32>,
    %c0_51 = arith.constant 0 : index
    %c0_52 = arith.constant 0 : index
    %c0_53 = arith.constant 0 : index
    %c26 = arith.constant 26 : index
    %33 = vector.load %arg2[%c0_51, %c0_52, %c0_53, %c26] : memref<1x1x1x512xf32, #tpu.memory_space<vmem>>, vector<1x1x1x384xf32>
    %34 = vector.shape_cast %33 : vector<1x1x1x384xf32> to vector<1x384xf32>
    %c11 = arith.constant 11 : index
    %c0_54 = arith.constant 0 : index
    %35 = vector.load %arg7[%c11, %c0_54] : memref<24x384xf32, #tpu.memory_space<vmem>>, vector<1x384xf32>
    tpu.vector_store %arg7[%c11, %c0_54], %34 {strides = array<i32>} : memref<24x384xf32, #tpu.memory_space<vmem>>, vector<1x384xf32>,
    %c0_55 = arith.constant 0 : index
    %c0_56 = arith.constant 0 : index
    %c0_57 = arith.constant 0 : index
    %c27 = arith.constant 27 : index
    %36 = vector.load %arg2[%c0_55, %c0_56, %c0_57, %c27] : memref<1x1x1x512xf32, #tpu.memory_space<vmem>>, vector<1x1x1x384xf32>
    %37 = vector.shape_cast %36 : vector<1x1x1x384xf32> to vector<1x384xf32>
    %c12 = arith.constant 12 : index
    %c0_58 = arith.constant 0 : index
    %38 = vector.load %arg7[%c12, %c0_58] : memref<24x384xf32, #tpu.memory_space<vmem>>, vector<1x384xf32>
    tpu.vector_store %arg7[%c12, %c0_58], %37 {strides = array<i32>} : memref<24x384xf32, #tpu.memory_space<vmem>>, vector<1x384xf32>,
    %c0_59 = arith.constant 0 : index
    %c0_60 = arith.constant 0 : index
    %c0_61 = arith.constant 0 : index
    %c28 = arith.constant 28 : index
    %39 = vector.load %arg2[%c0_59, %c0_60, %c0_61, %c28] : memref<1x1x1x512xf32, #tpu.memory_space<vmem>>, vector<1x1x1x384xf32>
    %40 = vector.shape_cast %39 : vector<1x1x1x384xf32> to vector<1x384xf32>
    %c13 = arith.constant 13 : index
    %c0_62 = arith.constant 0 : index
    %41 = vector.load %arg7[%c13, %c0_62] : memref<24x384xf32, #tpu.memory_space<vmem>>, vector<1x384xf32>
    tpu.vector_store %arg7[%c13, %c0_62], %40 {strides = array<i32>} : memref<24x384xf32, #tpu.memory_space<vmem>>, vector<1x384xf32>,
    %c0_63 = arith.constant 0 : index
    %c0_64 = arith.constant 0 : index
    %c0_65 = arith.constant 0 : index
    %c44 = arith.constant 44 : index
    %42 = vector.load %arg2[%c0_63, %c0_64, %c0_65, %c44] : memref<1x1x1x512xf32, #tpu.memory_space<vmem>>, vector<1x1x1x384xf32>
    %43 = vector.shape_cast %42 : vector<1x1x1x384xf32> to vector<1x384xf32>
    %c14 = arith.constant 14 : index
    %c0_66 = arith.constant 0 : index
    %44 = vector.load %arg7[%c14, %c0_66] : memref<24x384xf32, #tpu.memory_space<vmem>>, vector<1x384xf32>
    tpu.vector_store %arg7[%c14, %c0_66], %43 {strides = array<i32>} : memref<24x384xf32, #tpu.memory_space<vmem>>, vector<1x384xf32>,
    %c0_67 = arith.constant 0 : index
    %c0_68 = arith.constant 0 : index
    %c0_69 = arith.constant 0 : index
    %c45 = arith.constant 45 : index
    %45 = vector.load %arg2[%c0_67, %c0_68, %c0_69, %c45] : memref<1x1x1x512xf32, #tpu.memory_space<vmem>>, vector<1x1x1x384xf32>
    %46 = vector.shape_cast %45 : vector<1x1x1x384xf32> to vector<1x384xf32>
    %c15 = arith.constant 15 : index
    %c0_70 = arith.constant 0 : index
    %47 = vector.load %arg7[%c15, %c0_70] : memref<24x384xf32, #tpu.memory_space<vmem>>, vector<1x384xf32>
    tpu.vector_store %arg7[%c15, %c0_70], %46 {strides = array<i32>} : memref<24x384xf32, #tpu.memory_space<vmem>>, vector<1x384xf32>,
    %c0_71 = arith.constant 0 : index
    %c0_72 = arith.constant 0 : index
    %c0_73 = arith.constant 0 : index
    %c46 = arith.constant 46 : index
    %48 = vector.load %arg2[%c0_71, %c0_72, %c0_73, %c46] : memref<1x1x1x512xf32, #tpu.memory_space<vmem>>, vector<1x1x1x384xf32>
    %49 = vector.shape_cast %48 : vector<1x1x1x384xf32> to vector<1x384xf32>
    %c16 = arith.constant 16 : index
    %c0_74 = arith.constant 0 : index
    %50 = vector.load %arg7[%c16, %c0_74] : memref<24x384xf32, #tpu.memory_space<vmem>>, vector<1x384xf32>
    tpu.vector_store %arg7[%c16, %c0_74], %49 {strides = array<i32>} : memref<24x384xf32, #tpu.memory_space<vmem>>, vector<1x384xf32>,
    %c0_75 = arith.constant 0 : index
    %c0_76 = arith.constant 0 : index
    %c0_77 = arith.constant 0 : index
    %c47 = arith.constant 47 : index
    %51 = vector.load %arg2[%c0_75, %c0_76, %c0_77, %c47] : memref<1x1x1x512xf32, #tpu.memory_space<vmem>>, vector<1x1x1x384xf32>
    %52 = vector.shape_cast %51 : vector<1x1x1x384xf32> to vector<1x384xf32>
    %c17 = arith.constant 17 : index
    %c0_78 = arith.constant 0 : index
    %53 = vector.load %arg7[%c17, %c0_78] : memref<24x384xf32, #tpu.memory_space<vmem>>, vector<1x384xf32>
    tpu.vector_store %arg7[%c17, %c0_78], %52 {strides = array<i32>} : memref<24x384xf32, #tpu.memory_space<vmem>>, vector<1x384xf32>,
    %c0_79 = arith.constant 0 : index
    %c0_80 = arith.constant 0 : index
    %c0_81 = arith.constant 0 : index
    %c48 = arith.constant 48 : index
    %54 = vector.load %arg2[%c0_79, %c0_80, %c0_81, %c48] : memref<1x1x1x512xf32, #tpu.memory_space<vmem>>, vector<1x1x1x384xf32>
    %55 = vector.shape_cast %54 : vector<1x1x1x384xf32> to vector<1x384xf32>
    %c18 = arith.constant 18 : index
    %c0_82 = arith.constant 0 : index
    %56 = vector.load %arg7[%c18, %c0_82] : memref<24x384xf32, #tpu.memory_space<vmem>>, vector<1x384xf32>
    tpu.vector_store %arg7[%c18, %c0_82], %55 {strides = array<i32>} : memref<24x384xf32, #tpu.memory_space<vmem>>, vector<1x384xf32>,
    %c0_83 = arith.constant 0 : index
    %c0_84 = arith.constant 0 : index
    %c0_85 = arith.constant 0 : index
    %c49 = arith.constant 49 : index
    %57 = vector.load %arg2[%c0_83, %c0_84, %c0_85, %c49] : memref<1x1x1x512xf32, #tpu.memory_space<vmem>>, vector<1x1x1x384xf32>
    %58 = vector.shape_cast %57 : vector<1x1x1x384xf32> to vector<1x384xf32>
    %c19 = arith.constant 19 : index
    %c0_86 = arith.constant 0 : index
    %59 = vector.load %arg7[%c19, %c0_86] : memref<24x384xf32, #tpu.memory_space<vmem>>, vector<1x384xf32>
    tpu.vector_store %arg7[%c19, %c0_86], %58 {strides = array<i32>} : memref<24x384xf32, #tpu.memory_space<vmem>>, vector<1x384xf32>,
    %c0_87 = arith.constant 0 : index
    %c0_88 = arith.constant 0 : index
    %c0_89 = arith.constant 0 : index
    %c50 = arith.constant 50 : index
    %60 = vector.load %arg2[%c0_87, %c0_88, %c0_89, %c50] : memref<1x1x1x512xf32, #tpu.memory_space<vmem>>, vector<1x1x1x384xf32>
    %61 = vector.shape_cast %60 : vector<1x1x1x384xf32> to vector<1x384xf32>
    %c20 = arith.constant 20 : index
    %c0_90 = arith.constant 0 : index
    %62 = vector.load %arg7[%c20, %c0_90] : memref<24x384xf32, #tpu.memory_space<vmem>>, vector<1x384xf32>
    tpu.vector_store %arg7[%c20, %c0_90], %61 {strides = array<i32>} : memref<24x384xf32, #tpu.memory_space<vmem>>, vector<1x384xf32>,
    %cst = arith.constant 0.000000e+00 : f32
    %63 = vector.broadcast %cst : f32 to vector<3x384xf32>
    %c21 = arith.constant 21 : index
    %c0_91 = arith.constant 0 : index
    %64 = vector.load %arg7[%c21, %c0_91] : memref<24x384xf32, #tpu.memory_space<vmem>>, vector<3x384xf32>
    tpu.vector_store %arg7[%c21, %c0_91], %63 {strides = array<i32>} : memref<24x384xf32, #tpu.memory_space<vmem>>, vector<3x384xf32>,
    %c0_92 = arith.constant 0 : index
    %c0_93 = arith.constant 0 : index
    %65 = vector.load %arg3[%c0_92, %c0_93] : memref<64x24xf32, #tpu.memory_space<vmem>>, vector<64x24xf32>
    %c0_94 = arith.constant 0 : index
    %c0_95 = arith.constant 0 : index
    %66 = vector.load %arg7[%c0_94, %c0_95] : memref<24x384xf32, #tpu.memory_space<vmem>>, vector<24x384xf32>
    %cst_96 = arith.constant dense<0.000000e+00> : vector<64x384xf32>
    %67 = tpu.matmul %65, %66, %cst_96 {dimension_numbers = #tpu.dot_dimension_numbers<[1], [0], [0], [1], [0, 0, 1, 1], [], []>} : vector<64x24xf32>, vector<24x384xf32>, vector<64x384xf32> -> vector<64x384xf32>
    %c0_97 = arith.constant 0 : index
    %c0_98 = arith.constant 0 : index
    %68 = vector.load %arg4[%c0_97, %c0_98] : memref<64x1xf32, #tpu.memory_space<vmem>>, vector<64x1xf32>
    %69 = vector.broadcast %68 : vector<64x1xf32> to vector<64x384xf32>
    %70 = arith.addf %67, %69 : vector<64x384xf32>
    %c0_99 = arith.constant 0 : index
    %c0_100 = arith.constant 0 : index
    %71 = memref.load %arg5[%c0_99, %c0_100] : memref<1x1xf32, #tpu.memory_space<smem>>
    %cst_101 = arith.constant 0.000000e+00 : f32
    %72 = vector.broadcast %cst_101 : f32 to vector<64x384xf32>
    %73 = arith.cmpf oge, %70, %72 : vector<64x384xf32>
    %74 = vector.broadcast %71 : f32 to vector<64x384xf32>
    %75 = arith.mulf %74, %70 : vector<64x384xf32>
    %76 = arith.select %73, %70, %75 : vector<64x384xi1>, vector<64x384xf32>
    %c0_102 = arith.constant 0 : index
    %c0_103 = arith.constant 0 : index
    %c0_104 = arith.constant 0 : index
    %77 = vector.load %arg6[%c0_102, %c0_103, %c0_104] : memref<1x64x384xf32, #tpu.memory_space<vmem>>, vector<1x64x384xf32>
    %78 = vector.shape_cast %77 : vector<1x64x384xf32> to vector<64x384xf32>
    %79 = vector.shape_cast %76 : vector<64x384xf32> to vector<1x64x384xf32>
    tpu.vector_store %arg6[%c0_102, %c0_103, %c0_104], %79 {strides = array<i32>} : memref<1x64x384xf32, #tpu.memory_space<vmem>>, vector<1x64x384xf32>,
    return
  }
  func.func @transform_0(%arg0: i32, %arg1: i32) -> (i32, i32, i32, i32) {
    %c0_i32 = arith.constant 0 : i32
    %c0_i32_0 = arith.constant 0 : i32
    %c0_i32_1 = arith.constant 0 : i32
    return %arg0, %arg1, %c0_i32, %c0_i32_0 : i32, i32, i32, i32
  }
  func.func @transform_1(%arg0: i32, %arg1: i32) -> (i32, i32) {
    %c0_i32 = arith.constant 0 : i32
    %c0_i32_0 = arith.constant 0 : i32
    %c0_i32_1 = arith.constant 0 : i32
    return %c0_i32, %c0_i32_0 : i32, i32
  }
  func.func @transform_2(%arg0: i32, %arg1: i32) -> (i32, i32) {
    %c0_i32 = arith.constant 0 : i32
    %c0_i32_0 = arith.constant 0 : i32
    %c0_i32_1 = arith.constant 0 : i32
    return %c0_i32, %c0_i32_0 : i32, i32
  }
  func.func @transform_3(%arg0: i32, %arg1: i32) -> (i32, i32) {
    %c0_i32 = arith.constant 0 : i32
    %c0_i32_0 = arith.constant 0 : i32
    %c0_i32_1 = arith.constant 0 : i32
    return %c0_i32, %c0_i32_0 : i32, i32
  }
  func.func @transform_4(%arg0: i32, %arg1: i32) -> (i32, i32, i32) {
    %c0_i32 = arith.constant 0 : i32
    %c0_i32_0 = arith.constant 0 : i32
    return %arg0, %c0_i32, %arg1 : i32, i32, i32
  }
}

</mosaic_0001>

<bundles_post_ra>
// kernel: basic_block_forward.1
= control target key start
LH: loop header
LB: loop body
LE: loop exit
PB: predicated region body
PF: predicated region fallthrough
CT: control target
= control target key end

     0   :  { %s1139_s17 = smov 0   ;;  %s1141_s18 = smov 0   ;;  %s1407_s0 = inlined_call_operand.vmem [shape: f32[2,1,1,512], index: 0, kind: input, shape index: {}]   ;;  %s1408_s1 = inlined_call_operand.vmem [shape: f32[64,24], index: 1, kind: input, shape index: {}]   ;;  %s1409_s2 = inlined_call_operand.vmem [shape: f32[64,1], index: 2, kind: input, shape index: {}]   ;;  %s1410_s3 = inlined_call_operand.<no memory space> [shape: f32[1,1], index: 3, kind: input, shape index: {}]   ;;  %s1411_s4 = inlined_call_operand.vmem [shape: f32[2,64,384], index: 4, kind: output, shape index: {}]  }
   0x1   :  { %9 = sst [smem:[#allocation3]] %s1410_s3  ;;  %s1143_s19 = smov 0  }
   0x2 LB: > { %s27_s3 = sadd.s32 1, %s1083_s18  ;;  %p960_p0 = scmp.ge.s32.totalorder %s1087_s19, 1  ;;  %s1087_s19 = sphi %s1143_s19, %s15_s19   ;;  %s1083_s18 = sphi %s1141_s18, %s1415_s18   ;;  %s1079_s17 = sphi %s1139_s17, %s1414_s17  }
   0x3   : > { %p29_p1 = scmp.ge.s32.totalorder %s27_s3, 2  ;;  %p182_p2 = scmp.lt.s32.totalorder %s1087_s19, 3 }
   0x5   : > { %s1417_s3 = smov (%p29_p1, %s27_s3), 0  ;;  %p183_p3 = pnand %p960_p0, %p182_p2 }
   0x6   : > { %p215_p4 = scmp.lt.s32.totalorder (!%p183_p3), %s1079_s17, 1  ;;  %s1090_s24 = smov (!%p183_p3), 80  }
   0x7   : > { %186 = sbr.rel (%p183_p3) target bundleno = 405 (0x195), region = 36  ;;  %s1091_s25 = smov (!%p183_p3), 82  }
   0x8   : > { %s1092_s26 = smov (!%p183_p3), 79   ;;  %s1093_s27 = smov (!%p183_p3), 81  }
   0x9   : > { %s1094_s28 = smov (!%p183_p3), 78   ;;  %s1095_s29 = smov (!%p183_p3), 105  }
   0xa   : > { %s1096_s30 = smov (!%p183_p3), 104   ;;  %s1097_s5 = smov (!%p183_p3), 103  }
   0xb   : > { %s1098_s6 = smov (!%p183_p3), 102   ;;  %s1099_s7 = smov (!%p183_p3), 101  }
   0xc   : > { %s1419_s17 = smov (!%p215_p4, %s1079_s17), 1  ;;  %v1089_v0 = vmov 0.0   ;;  %s1100_s8 = smov 100   ;;  %v234_v13 = vlaneseq  ;;  %v481_v24 = vld [vmem:[%s1409_s2 + $0x8] sm:$0xff]  ;;  %v480_v25 = vld [vmem:[%s1409_s2] sm:$0xff]  ;;  %v1110_v26 = vmov 0  }
   0xd   : > { %s961_s20 = sshll.u32 %s1419_s17, 2  ;;  %461 = vst [vmem:[#allocation2 + $0x38] sm:$0xe0] %v1089_v0  ;;  %460 = vst [vmem:[#allocation2 + $0x30] sm:$0xe0] %v1089_v0  ;;  %617 = vmatprep.mubr.f32.mxu0 %v1089_v0  ;;  %653 = vmatprep.mubr.f32.mxu1 %v1089_v0  ;;  %s1101_s9 = smov 84  }
   0xe   : > { %s1163_s23 = scalar_lea.vmem %s1407_s0, %s961_s20  ;;  %462 = vst [vmem:[#allocation2 + $0x40] sm:$0xe0] %v1089_v0  ;;  %s1102_s10 = smov 83   ;;  %vm1185_vm0 = vcmp.lt.s32.totalorder %v234_v13, 384  ;;  %1064 = vset.pattern.permute.xlu1 %v1110_v26  ;;  %1063 = vset.pattern.permute.xlu0 %v1110_v26  ;;  %v482_v27 = vld [vmem:[%s1409_s2 + $0x10] sm:$0xff]  ;;  %v483_v28 = vld [vmem:[%s1409_s2 + $0x18] sm:$0xff] }
   0xf   : > { %v427_v1 = vld [vmem:[%s1163_s23] sm:$0xf]  ;;  %s1103_s11 = smov 127   ;;  %s1104_s12 = smov 126   ;;  %v485_v30 = vld [vmem:[%s1409_s2 + $0x28] sm:$0xff]  ;;  %v486_v31 = vld [vmem:[%s1409_s2 + $0x30] sm:$0xff] }
  0x10   : > { %v405_v2 = vld [vmem:[%s1163_s23] sm:$0xf]  ;;  %429 = vrot.lane.b32.xlu1 %v427_v1, %s1090_s24  ;;  %s1105_s13 = smov 125   ;;  %s1106_s14 = smov 124   ;;  %v487_v32 = vld [vmem:[%s1409_s2 + $0x38] sm:$0xff]  ;;  %vm432_vm1 = vcmask 654336  }
  0x11   : > { %407 = vrot.lane.b32.xlu0 %v405_v2, %s1091_s25  ;;  %v438_v3 = vld [vmem:[%s1163_s23] sm:$0xf]  ;;  %s1107_s15 = smov 123   ;;  %s1108_s16 = smov 122   ;;  %vm410_vm2 = vcmask 670720   ;;  %vm443_vm3 = vcmask 646144  }
  0x12   : > { %v416_v4 = vld [vmem:[%s1163_s23] sm:$0xf]  ;;  %s1109_s20 = smov 106   ;;  %vm421_vm4 = vcmask 662528   ;;  %vm454_vm5 = vcmask 637952   ;;  %vm322_vm6 = vcmask 859136  }
  0x13   : > { %v449_v5 = vld [vmem:[%s1163_s23] sm:$0xf]  ;;  %vm333_vm7 = vcmask 850944   ;;  %vm344_vm8 = vcmask 842752   ;;  %vm355_vm9 = vcmask 834560   ;;  %vm366_vm10 = vcmask 826368  }
  0x14   : > { %440 = vrot.lane.b32.xlu1 %v438_v3, %s1092_s26  ;;  %v317_v6 = vld [vmem:[%s1163_s23] sm:$0xf]  ;;  %vm377_vm11 = vcmask 818176   ;;  %vm388_vm12 = vcmask 687104   ;;  %vm399_vm13 = vcmask 678912   ;;  %vm245_vm14 = vcmask 1039360  }
  0x15   : > { %418 = vrot.lane.b32.xlu0 %v416_v4, %s1093_s27  ;;  %v328_v7 = vld [vmem:[%s1163_s23] sm:$0xf]  ;;  %vm256_vm15 = vcmask 1031168  }
  0x16   : > { %v339_v8 = vld [vmem:[%s1163_s23] sm:$0xf] }
  0x17   : > { %v350_v9 = vld [vmem:[%s1163_s23] sm:$0xf] }
  0x18   : > { %319 = vrot.lane.b32.xlu1 %v317_v6, %s1095_s29  ;;  %v361_v10 = vld [vmem:[%s1163_s23] sm:$0xf] }
  0x19   : > { %451 = vrot.lane.b32.xlu0 %v449_v5, %s1094_s28  ;;  %v372_v11 = vld [vmem:[%s1163_s23] sm:$0xf] }
  0x1a   : > { %v383_v12 = vld [vmem:[%s1163_s23] sm:$0xf] }
  0x1b   : > { %v394_v14 = vld [vmem:[%s1163_s23] sm:$0xf] }
  0x1c   : > { %341 = vrot.lane.b32.xlu1 %v339_v8, %s1097_s5  ;;  %v240_v15 = vld [vmem:[%s1163_s23] sm:$0xf]  ;;  %s1016_s5 = smul.u32 192, %s1419_s17 }
  0x1d   : > { %330 = vrot.lane.b32.xlu0 %v328_v7, %s1096_s30  ;;  %v251_v16 = vld [vmem:[%s1163_s23] sm:$0xf]  ;;  %s771_s30 = sld [smem:[#allocation3]] }
  0x1e   : > { %v262_v18 = vld [vmem:[%s1163_s23] sm:$0xf] }
  0x1f   : > { %v233_v19 = vld [vmem:[%s1163_s23] sm:$0x7] }
  0x20   : > { %363 = vrot.lane.b32.xlu1 %v361_v10, %s1099_s7  ;;  %238 = vst.msk [vmem:[#allocation2] ss:$8 sm:$0x7] %vm1185_vm0, %v233_v19  ;;  %v273_v20 = vld [vmem:[%s1163_s23] sm:$0xf] }
  0x21   : > { %352 = vrot.lane.b32.xlu0 %v350_v9, %s1098_s6  ;;  %v284_v21 = vld [vmem:[%s1163_s23] sm:$0xf] }
  0x22   : > { %v295_v22 = vld [vmem:[%s1163_s23] sm:$0xf] }
  0x23   : > { %v306_v23 = vld [vmem:[%s1163_s23] sm:$0xf] }
  0x24   : > { %385 = vrot.lane.b32.xlu1 %v383_v12, %s1101_s9  ;;  %v484_v29 = vld [vmem:[%s1409_s2 + $0x20] sm:$0xff] }
  0x25   : > { %374 = vrot.lane.b32.xlu0 %v372_v11, %s1100_s8  ;;  %s1327_s8 = scalar_lea.vmem %s1411_s4, %s1016_s5 }
  0x28   : > { %242 = vrot.lane.b32.xlu1 %v240_v15, %s1103_s11 }
  0x29   : > { %396 = vrot.lane.b32.xlu0 %v394_v14, %s1102_s10 }
  0x2c   : > { %264 = vrot.lane.b32.xlu1 %v262_v18, %s1105_s13 }
  0x2d   : > { %253 = vrot.lane.b32.xlu0 %v251_v16, %s1104_s12 }
  0x30   : > { %286 = vrot.lane.b32.xlu1 %v284_v21, %s1107_s15 }
  0x31   : > { %275 = vrot.lane.b32.xlu0 %v273_v20, %s1106_s14 }
  0x34   : > { %308 = vrot.lane.b32.xlu1 %v306_v23, %s1109_s20 }
  0x35   : > { %297 = vrot.lane.b32.xlu0 %v295_v22, %s1108_s16 }
  0x38   : > { %495 = vperm.xlu1 %1064, %v481_v24  }
  0x39   : > { %490 = vperm.xlu0 %1063, %v480_v25  }
  0x3c   : > { %500 = vperm.xlu1 %1064, %v482_v27  }
  0x3d   : > { %505 = vperm.xlu0 %1063, %v483_v28  }
  0x40   : > { %510 = vperm.xlu1 %1064, %v484_v29  }
  0x41   : > { %515 = vperm.xlu0 %1063, %v485_v30  }
  0x44   : > { %520 = vperm.xlu1 %1064, %v486_v31  }
  0x45   : > { %525 = vperm.xlu0 %1063, %v487_v32  }
  0x82   : > { %v430_v33 = vpop.permute.xlu1 %429 }
  0x83   : > { %v408_v34 = vpop.permute.xlu0 %407  ;;  %v431_v35 = vrot.slane %v430_v33, 1 }
  0x84   : > { %v409_v36 = vrot.slane %v408_v34, 1 }
  0x85   : > { %v433_v37 = vsel %vm432_vm1, %v430_v33, %v431_v35  ;;  %vm267_vm1 = vcmask 1022976   ;;  %v463_v35 = vld [vmem:[%s1408_s1] sm:$0xff] }
  0x86   : > { %v411_v38 = vsel %vm410_vm2, %v408_v34, %v409_v36  ;;  %436 = vst.msk [vmem:[#allocation2 + $0x32] ss:$8 sm:$0x7] %vm1185_vm0, %v433_v37  ;;  %v441_v39 = vpop.permute.xlu1 %440  ;;  %vm278_vm2 = vcmask 1014784  }
  0x87   : > { %414 = vst.msk [vmem:[#allocation2 + $0x30] ss:$8 sm:$0x7] %vm1185_vm0, %v411_v38  ;;  %v419_v40 = vpop.permute.xlu0 %418  ;;  %v442_v41 = vrot.slane %v441_v39, 1  ;;  %v469_v38 = vld [vmem:[%s1408_s1 + $0x30] sm:$0xff] }
  0x88   : > { %v420_v42 = vrot.slane %v419_v40, 1 }
  0x89   : > { %v444_v43 = vsel %vm443_vm3, %v441_v39, %v442_v41  ;;  %vm289_vm3 = vcmask 1006592   ;;  %v464_v39 = vld [vmem:[%s1408_s1 + $0x8] sm:$0xff]  ;;  %v470_v41 = vld [vmem:[%s1408_s1 + $0x38] sm:$0xff] }
  0x8a   : > { %v422_v44 = vsel %vm421_vm4, %v419_v40, %v420_v42  ;;  %447 = vst.msk [vmem:[#allocation2 + $0x33] ss:$8 sm:$0x7] %vm1185_vm0, %v444_v43  ;;  %v320_v46 = vpop.permute.xlu1 %319  ;;  %vm300_vm4 = vcmask 998400   ;;  %v465_v43 = vld [vmem:[%s1408_s1 + $0x10] sm:$0xff] }
  0x8b   : > { %425 = vst.msk [vmem:[#allocation2 + $0x31] ss:$8 sm:$0x7] %vm1185_vm0, %v422_v44  ;;  %v452_v45 = vpop.permute.xlu0 %451  ;;  %v321_v48 = vrot.slane %v320_v46, 1  ;;  %v466_v44 = vld [vmem:[%s1408_s1 + $0x18] sm:$0xff] }
  0x8c   : > { %v453_v47 = vrot.slane %v452_v45, 1 }
  0x8d   : > { %v323_v50 = vsel %vm322_vm6, %v320_v46, %v321_v48  ;;  %vm528_vm6 = vcmask 195584   ;;  %v468_v46 = vld [vmem:[%s1408_s1 + $0x28] sm:$0xff] }
  0x8e   : > { %v455_v49 = vsel %vm454_vm5, %v452_v45, %v453_v47  ;;  %326 = vst.msk [vmem:[#allocation2 + $0x18] ss:$8 sm:$0x7] %vm1185_vm0, %v323_v50  ;;  %v342_v52 = vpop.permute.xlu1 %341  ;;  %vm311_vm5 = vcmask 867328   ;;  %v467_v45 = vld [vmem:[%s1408_s1 + $0x20] sm:$0xff] }
  0x8f   : > { %458 = vst.msk [vmem:[#allocation2 + $0x34] ss:$8 sm:$0x7] %vm1185_vm0, %v455_v49  ;;  %v331_v51 = vpop.permute.xlu0 %330  ;;  %v343_v54 = vrot.slane %v342_v52, 1 }
  0x90   : > { %v332_v53 = vrot.slane %v331_v51, 1 }
  0x91   : > { %v345_v56 = vsel %vm344_vm8, %v342_v52, %v343_v54  ;;  %v1320_v54 = vstv %s771_s30 }
  0x92   : > { %v334_v55 = vsel %vm333_vm7, %v331_v51, %v332_v53  ;;  %348 = vst.msk [vmem:[#allocation2 + $0x1a] ss:$8 sm:$0x7] %vm1185_vm0, %v345_v56  ;;  %v364_v58 = vpop.permute.xlu1 %363 }
  0x93   : > { %337 = vst.msk [vmem:[#allocation2 + $0x19] ss:$8 sm:$0x7] %vm1185_vm0, %v334_v55  ;;  %v353_v57 = vpop.permute.xlu0 %352  ;;  %v365_v60 = vrot.slane %v364_v58, 1 }
  0x94   : > { %v354_v59 = vrot.slane %v353_v57, 1 }
  0x95   : > { %v367_v62 = vsel %vm366_vm10, %v364_v58, %v365_v60 }
  0x96   : > { %v356_v61 = vsel %vm355_vm9, %v353_v57, %v354_v59  ;;  %v478_v63 = vld [vmem:[#allocation2 + $0x38] sm:$0xff]  ;;  %v477_v1 = vld [vmem:[#allocation2 + $0x30] sm:$0xff]  ;;  %370 = vst.msk [vmem:[#allocation2 + $0x1c] ss:$8 sm:$0x7] %vm1185_vm0, %v367_v62  ;;  %v386_v3 = vpop.permute.xlu1 %385  ;;  %v479_v17 = vld [vmem:[#allocation2 + $0x40] sm:$0xff] }
  0x97   : > { %359 = vst.msk [vmem:[#allocation2 + $0x1b] ss:$8 sm:$0x7] %vm1185_vm0, %v356_v61  ;;  %579 = vmatprep.subr.mxu0 %v478_v63  ;;  %1010 = vmatprep.subr.mxu1 %v478_v63  ;;  %v375_v2 = vpop.permute.xlu0 %374  ;;  %v387_v5 = vrot.slane %v386_v3, 1 }
  0x98   : > { %v376_v4 = vrot.slane %v375_v2, 1  ;;  %580 = vmatpush1.msra.mxu0 %v477_v1  ;;  %1013 = vmatpush1.msra.mxu1 %v477_v1 }
  0x99   : > { %v389_v7 = vsel %vm388_vm12, %v386_v3, %v387_v5 }
  0x9a   : > { %v378_v6 = vsel %vm377_vm11, %v375_v2, %v376_v4  ;;  %392 = vst.msk [vmem:[#allocation2 + $0x1e] ss:$8 sm:$0x7] %vm1185_vm0, %v389_v7  ;;  %v243_v9 = vpop.permute.xlu1 %242 }
  0x9b   : > { %381 = vst.msk [vmem:[#allocation2 + $0x1d] ss:$8 sm:$0x7] %vm1185_vm0, %v378_v6  ;;  %v397_v8 = vpop.permute.xlu0 %396  ;;  %v244_v11 = vrot.slane %v243_v9, 1 }
  0x9c   : > { %v398_v10 = vrot.slane %v397_v8, 1 }
  0x9d   : > { %v246_v13 = vsel %vm245_vm14, %v243_v9, %v244_v11 }
  0x9e   : > { %v400_v12 = vsel %vm399_vm13, %v397_v8, %v398_v10  ;;  %249 = vst.msk [vmem:[#allocation2 + $0x1] ss:$8 sm:$0x7] %vm1185_vm0, %v246_v13  ;;  %v265_v15 = vpop.permute.xlu1 %264 }
  0x9f   : > { %403 = vst.msk [vmem:[#allocation2 + $0x1f] ss:$8 sm:$0x7] %vm1185_vm0, %v400_v12  ;;  %v254_v14 = vpop.permute.xlu0 %253  ;;  %v266_v18 = vrot.slane %v265_v15, 1 }
  0xa0   : > { %v255_v16 = vrot.slane %v254_v14, 1 }
  0xa1   : > { %v268_v20 = vsel %vm267_vm1, %v265_v15, %v266_v18 }
  0xa2   : > { %v257_v19 = vsel %vm256_vm15, %v254_v14, %v255_v16  ;;  %271 = vst.msk [vmem:[#allocation2 + $0x3] ss:$8 sm:$0x7] %vm1185_vm0, %v268_v20  ;;  %v287_v22 = vpop.permute.xlu1 %286 }
  0xa3   : > { %260 = vst.msk [vmem:[#allocation2 + $0x2] ss:$8 sm:$0x7] %vm1185_vm0, %v257_v19  ;;  %v276_v21 = vpop.permute.xlu0 %275  ;;  %v288_v24 = vrot.slane %v287_v22, 1 }
  0xa4   : > { %v277_v23 = vrot.slane %v276_v21, 1 }
  0xa5   : > { %v290_v26 = vsel %vm289_vm3, %v287_v22, %v288_v24 }
  0xa6   : > { %v279_v25 = vsel %vm278_vm2, %v276_v21, %v277_v23  ;;  %v475_v27 = vld [vmem:[#allocation2 + $0x20] sm:$0xff]  ;;  %v474_v28 = vld [vmem:[#allocation2 + $0x18] sm:$0xff]  ;;  %293 = vst.msk [vmem:[#allocation2 + $0x5] ss:$8 sm:$0x7] %vm1185_vm0, %v290_v26  ;;  %v309_v30 = vpop.permute.xlu1 %308  ;;  %v476_v40 = vld [vmem:[#allocation2 + $0x28] sm:$0xff] }
  0xa7   : > { %282 = vst.msk [vmem:[#allocation2 + $0x4] ss:$8 sm:$0x7] %vm1185_vm0, %v279_v25  ;;  %581 = vmatprep.subr.mxu0 %v475_v27  ;;  %1011 = vmatprep.subr.mxu1 %v475_v27  ;;  %v298_v29 = vpop.permute.xlu0 %297  ;;  %v310_v32 = vrot.slane %v309_v30, 1 }
  0xa8   : > { %v299_v31 = vrot.slane %v298_v29, 1  ;;  %582 = vmatpush1.msra.mxu0 %v474_v28  ;;  %1014 = vmatpush1.msra.mxu1 %v474_v28 }
  0xa9   : > { %v312_v34 = vsel %vm311_vm5, %v309_v30, %v310_v32 }
  0xaa   : > { %v301_v33 = vsel %vm300_vm4, %v298_v29, %v299_v31  ;;  %315 = vst.msk [vmem:[#allocation2 + $0x7] ss:$8 sm:$0x7] %vm1185_vm0, %v312_v34 }
  0xab   : > { %304 = vst.msk [vmem:[#allocation2 + $0x6] ss:$8 sm:$0x7] %vm1185_vm0, %v301_v33 }
  0xb2   : > { %v472_v36 = vld [vmem:[#allocation2 + $0x8] sm:$0xff]  ;;  %v471_v37 = vld [vmem:[#allocation2] sm:$0xff]  ;;  %v473_v42 = vld [vmem:[#allocation2 + $0x10] sm:$0xff] }
  0xb3   : > { %583 = vmatprep.subr.mxu0 %v472_v36  ;;  %1012 = vmatprep.subr.mxu1 %v472_v36  ;;  %v496_v47 = vpop.permute.xlu1 %495 }
  0xb4   : > { %584 = vmatpush1.msra.mxu0 %v471_v37  ;;  %1015 = vmatpush1.msra.mxu1 %v471_v37  ;;  %v1307_v48 = vpop.permute.xlu0 %490 }
  0xb5   : > { %963 = vmatmul.mubr.msk.f32.vlgmr.msra.gmra.mxu0 %vm528_vm6, %v463_v35  ;;  %969 = vmatmul.mubr.msk.f32.vlgmr.msra.gmra.mxu1 %vm528_vm6, %v469_v38 }
  0xb6   : > { %992 = vmatprep.subr.mxu1 %v479_v17  ;;  %623 = vmatprep.mubr.f32.mxu0 %v1089_v0 }
  0xb7   : > { %993 = vmatpush3.msra.mxu1 %v479_v17  ;;  %659 = vmatprep.mubr.f32.mxu1 %v1089_v0  ;;  %v1309_v49 = vpop.permute.xlu1 %500 }
  0xb8   : > { %994 = vmatprep.subr.mxu1 %v476_v40  ;;  %v1311_v50 = vpop.permute.xlu0 %505 }
  0xb9   : > { %995 = vmatpush3.msra.mxu1 %v476_v40  ;;  %964 = vmatmul.mubr.msk.f32.gmra.mxu0 %vm528_vm6, %v464_v39 }
  0xba   : > { %970 = vmatmul.mubr.msk.f32.gmra.mxu1 %vm528_vm6, %v470_v41  ;;  %996 = vmatprep.subr.mxu1 %v473_v42 }
  0xbb   : > { %997 = vmatpush3.msra.mxu1 %v473_v42  ;;  %629 = vmatprep.mubr.f32.mxu0 %v1089_v0  ;;  %v1313_v51 = vpop.permute.xlu1 %510 }
  0xbc   : > { %998 = vmatprep.mubr.msk.f32.mxu1 %vm528_vm6, %v463_v35  ;;  %v1315_v52 = vpop.permute.xlu0 %515 }
  0xbd   : > { %965 = vmatmul.mubr.msk.f32.gmra.mxu0 %vm528_vm6, %v465_v43 }
  0xbe   : > { %999 = vmatmul.mubr.msk.f32.vlgmr.msra.gmra.mxu1 %vm528_vm6, %v464_v39  ;;  %635 = vmatprep.mubr.f32.mxu0 %v1089_v0 }
  0xbf   : > { %1001 = vmatprep.mubr.msk.f32.mxu1 %vm528_vm6, %v465_v43  ;;  %v1317_v53 = vpop.permute.xlu1 %520 }
  0xc0   : > { %v1333_v1 = vpop.permute.xlu0 %525 }
  0xc1   : > { %966 = vmatmul.mubr.msk.f32.gmra.mxu0 %vm528_vm6, %v466_v44 }
  0xc2   : > { %1002 = vmatmul.mubr.msk.f32.gmra.mxu1 %vm528_vm6, %v466_v44  ;;  %641 = vmatprep.mubr.f32.mxu0 %v1089_v0 }
  0xc3   : > { %1004 = vmatprep.mubr.msk.f32.mxu1 %vm528_vm6, %v467_v45 }
  0xc5   : > { %967 = vmatmul.mubr.msk.f32.gmra.mxu0 %vm528_vm6, %v467_v45 }
  0xc6   : > { %1005 = vmatmul.mubr.msk.f32.gmra.mxu1 %vm528_vm6, %v468_v46  ;;  %647 = vmatprep.mubr.f32.mxu0 %v1089_v0 }
  0xc7   : > { %1007 = vmatprep.mubr.msk.f32.mxu1 %vm528_vm6, %v469_v38 }
  0xc9   : > { %968 = vmatmul.mubr.msk.f32.gmra.mxu0 %vm528_vm6, %v468_v46 }
  0xca   : > { %1008 = vmatmul.mubr.msk.f32.gmra.mxu1 %vm528_vm6, %v470_v41 }
 0x175   : > { %v619_v0 = vpop.f32.mrf.mxu0  ;;  %v655_v55 = vpop.f32.mrf.mxu1 }
 0x176   : > { %v620_v56 = vadd.f32 %v619_v0, %v1307_v48  ;;  %v656_v57 = vadd.f32 %v655_v55, %v1317_v53 }
 0x177   : > { %v621_v58 = vpop.f32.mrf.mxu0  ;;  %v657_v59 = vpop.f32.mrf.mxu1 }
 0x178   : > { %vm772_vm0 = vcmp.ge.f32.partialorder %v620_v56, 0.0  ;;  %v797_v60 = vmul.f32 %v1320_v54, %v620_v56  ;;  %vm790_vm7 = vcmp.ge.f32.partialorder %v656_v57, 0.0  ;;  %v815_v61 = vmul.f32 %v1320_v54, %v656_v57 }
 0x179   : > { %v622_v62 = vadd.f32 %v621_v58, %v1307_v48  ;;  %v658_v63 = vadd.f32 %v657_v59, %v1317_v53  ;;  %v625_v2 = vpop.f32.mrf.mxu0 }
 0x17a   : > { %v821_v3 = vsel %vm772_vm0, %v620_v56, %v797_v60  ;;  %v839_v4 = vsel %vm790_vm7, %v656_v57, %v815_v61  ;;  %v626_v5 = vadd.f32 %v625_v2, %v496_v47  ;;  %v661_v6 = vpop.f32.mrf.mxu1 }
 0x17b   : > { %845 = vst [vmem:[%s1327_s8] sm:$0xff] %v821_v3  ;;  %863 = vst [vmem:[%s1327_s8 + $0x90] sm:$0xff] %v839_v4  ;;  %vm773_vm8 = vcmp.ge.f32.partialorder %v622_v62, 0.0  ;;  %v798_v7 = vmul.f32 %v1320_v54, %v622_v62  ;;  %vm791_vm9 = vcmp.ge.f32.partialorder %v658_v63, 0.0  ;;  %v816_v8 = vmul.f32 %v1320_v54, %v658_v63  ;;  %v627_v9 = vpop.f32.mrf.mxu0 }
 0x17c   : > { %vm775_vm10 = vcmp.ge.f32.partialorder %v626_v5, 0.0  ;;  %v800_v10 = vmul.f32 %v1320_v54, %v626_v5  ;;  %v662_v11 = vadd.f32 %v661_v6, %v1333_v1  ;;  %v628_v12 = vadd.f32 %v627_v9, %v496_v47  ;;  %v663_v13 = vpop.f32.mrf.mxu1 }
 0x17d   : > { %v822_v14 = vsel %vm773_vm8, %v622_v62, %v798_v7  ;;  %v840_v15 = vsel %vm791_vm9, %v658_v63, %v816_v8  ;;  %v664_v16 = vadd.f32 %v663_v13, %v1333_v1  ;;  %v631_v18 = vpop.f32.mrf.mxu0 }
 0x17e   : > { %846 = vst [vmem:[%s1327_s8 + $0x8] sm:$0xff] %v822_v14  ;;  %864 = vst [vmem:[%s1327_s8 + $0x98] sm:$0xff] %v840_v15  ;;  %v824_v19 = vsel %vm775_vm10, %v626_v5, %v800_v10  ;;  %vm793_vm11 = vcmp.ge.f32.partialorder %v662_v11, 0.0  ;;  %v818_v20 = vmul.f32 %v1320_v54, %v662_v11  ;;  %vm776_vm12 = vcmp.ge.f32.partialorder %v628_v12, 0.0  ;;  %v1000_v21 = vpop.f32.mrf.mxu1 }
 0x17f   : > { %848 = vst [vmem:[%s1327_s8 + $0x18] sm:$0xff] %v824_v19  ;;  %v801_v22 = vmul.f32 %v1320_v54, %v628_v12  ;;  %vm794_vm13 = vcmp.ge.f32.partialorder %v664_v16, 0.0  ;;  %v819_v23 = vmul.f32 %v1320_v54, %v664_v16  ;;  %v632_v24 = vadd.f32 %v631_v18, %v1309_v49  ;;  %v633_v25 = vpop.f32.mrf.mxu0 }
 0x180   : > { %v842_v26 = vsel %vm793_vm11, %v662_v11, %v818_v20  ;;  %v738_v27 = vadd.f32 %v1000_v21, %v496_v47  ;;  %v634_v28 = vadd.f32 %v633_v25, %v1309_v49  ;;  %v732_v29 = vpop.f32.mrf.mxu1 }
 0x181   : > { %866 = vst [vmem:[%s1327_s8 + $0xa8] sm:$0xff] %v842_v26  ;;  %v825_v30 = vsel %vm776_vm12, %v628_v12, %v801_v22  ;;  %v843_v31 = vsel %vm794_vm13, %v664_v16, %v819_v23  ;;  %vm778_vm14 = vcmp.ge.f32.partialorder %v632_v24, 0.0  ;;  %v803_v32 = vmul.f32 %v1320_v54, %v632_v24  ;;  %v637_v33 = vpop.f32.mrf.mxu0 }
 0x182   : > { %849 = vst [vmem:[%s1327_s8 + $0x20] sm:$0xff] %v825_v30  ;;  %867 = vst [vmem:[%s1327_s8 + $0xb0] sm:$0xff] %v843_v31  ;;  %vm777_vm15 = vcmp.ge.f32.partialorder %v738_v27, 0.0  ;;  %v802_v34 = vmul.f32 %v1320_v54, %v738_v27  ;;  %vm779_vm1 = vcmp.ge.f32.partialorder %v634_v28, 0.0  ;;  %v804_v35 = vmul.f32 %v1320_v54, %v634_v28  ;;  %v1003_v36 = vpop.f32.mrf.mxu1 }
 0x183   : > { %v827_v37 = vsel %vm778_vm14, %v632_v24, %v803_v32  ;;  %v733_v38 = vadd.f32 %v732_v29, %v1307_v48  ;;  %v638_v17 = vadd.f32 %v637_v33, %v1311_v50  ;;  %v748_v39 = vadd.f32 %v1003_v36, %v1311_v50  ;;  %v639_v40 = vpop.f32.mrf.mxu0 }
 0x184   : > { %851 = vst [vmem:[%s1327_s8 + $0x30] sm:$0xff] %v827_v37  ;;  %v826_v41 = vsel %vm777_vm15, %v738_v27, %v802_v34  ;;  %v828_v42 = vsel %vm779_vm1, %v634_v28, %v804_v35  ;;  %v640_v43 = vadd.f32 %v639_v40, %v1311_v50  ;;  %v742_v44 = vpop.f32.mrf.mxu1 }
 0x185   : > { %850 = vst [vmem:[%s1327_s8 + $0x28] sm:$0xff] %v826_v41  ;;  %852 = vst [vmem:[%s1327_s8 + $0x38] sm:$0xff] %v828_v42  ;;  %vm774_vm2 = vcmp.ge.f32.partialorder %v733_v38, 0.0  ;;  %v799_v45 = vmul.f32 %v1320_v54, %v733_v38  ;;  %vm781_vm3 = vcmp.ge.f32.partialorder %v638_v17, 0.0  ;;  %v806_v46 = vmul.f32 %v1320_v54, %v638_v17  ;;  %v643_v47 = vpop.f32.mrf.mxu0 }
 0x186   : > { %vm783_vm4 = vcmp.ge.f32.partialorder %v748_v39, 0.0  ;;  %v808_v48 = vmul.f32 %v1320_v54, %v748_v39  ;;  %vm782_vm5 = vcmp.ge.f32.partialorder %v640_v43, 0.0  ;;  %v807_v50 = vmul.f32 %v1320_v54, %v640_v43  ;;  %v1006_v0 = vpop.f32.mrf.mxu1 }
 0x187   : > { %v823_v55 = vsel %vm774_vm2, %v733_v38, %v799_v45  ;;  %v830_v56 = vsel %vm781_vm3, %v638_v17, %v806_v46  ;;  %v743_v57 = vadd.f32 %v742_v44, %v1309_v49  ;;  %v644_v58 = vadd.f32 %v643_v47, %v1313_v51  ;;  %v645_v59 = vpop.f32.mrf.mxu0 }
 0x188   : > { %847 = vst [vmem:[%s1327_s8 + $0x10] sm:$0xff] %v823_v55  ;;  %854 = vst [vmem:[%s1327_s8 + $0x48] sm:$0xff] %v830_v56  ;;  %v832_v60 = vsel %vm783_vm4, %v748_v39, %v808_v48  ;;  %v831_v61 = vsel %vm782_vm5, %v640_v43, %v807_v50  ;;  %v758_v62 = vadd.f32 %v1006_v0, %v1315_v52  ;;  %v752_v2 = vpop.f32.mrf.mxu1 }
 0x189   : > { %v646_v63 = vadd.f32 %v645_v59, %v1313_v51  ;;  %856 = vst [vmem:[%s1327_s8 + $0x58] sm:$0xff] %v832_v60  ;;  %855 = vst [vmem:[%s1327_s8 + $0x50] sm:$0xff] %v831_v61  ;;  %vm780_vm6 = vcmp.ge.f32.partialorder %v743_v57, 0.0  ;;  %v805_v3 = vmul.f32 %v1320_v54, %v743_v57  ;;  %vm784_vm0 = vcmp.ge.f32.partialorder %v644_v58, 0.0  ;;  %v649_v4 = vpop.f32.mrf.mxu0 }
 0x18a   : > { %v809_v49 = vmul.f32 %v1320_v54, %v644_v58  ;;  %vm789_vm7 = vcmp.ge.f32.partialorder %v758_v62, 0.0  ;;  %v814_v5 = vmul.f32 %v1320_v54, %v758_v62  ;;  %v1009_v7 = vpop.f32.mrf.mxu1  ;;  %v753_v10 = vadd.f32 %v752_v2, %v1313_v51 }
 0x18b   : > { %vm785_vm8 = vcmp.ge.f32.partialorder %v646_v63, 0.0  ;;  %v810_v6 = vmul.f32 %v1320_v54, %v646_v63  ;;  %v829_v8 = vsel %vm780_vm6, %v743_v57, %v805_v3  ;;  %v650_v11 = vadd.f32 %v649_v4, %v1315_v52  ;;  %v651_v12 = vpop.f32.mrf.mxu0 }
 0x18c   : > { %v833_v9 = vsel %vm784_vm0, %v644_v58, %v809_v49  ;;  %853 = vst [vmem:[%s1327_s8 + $0x40] sm:$0xff] %v829_v8  ;;  %v838_v13 = vsel %vm789_vm7, %v758_v62, %v814_v5  ;;  %v768_v15 = vadd.f32 %v1009_v7, %v1333_v1  ;;  %v652_v16 = vadd.f32 %v651_v12, %v1315_v52  ;;  %v762_v18 = vpop.f32.mrf.mxu1 }
 0x18d   : > { %857 = vst [vmem:[%s1327_s8 + $0x60] sm:$0xff] %v833_v9  ;;  %v834_v14 = vsel %vm785_vm8, %v646_v63, %v810_v6  ;;  %862 = vst [vmem:[%s1327_s8 + $0x88] sm:$0xff] %v838_v13  ;;  %vm786_vm9 = vcmp.ge.f32.partialorder %v753_v10, 0.0  ;;  %v811_v51 = vmul.f32 %v1320_v54, %v753_v10  ;;  %vm787_vm10 = vcmp.ge.f32.partialorder %v650_v11, 0.0 }
 0x18e   : > { %858 = vst [vmem:[%s1327_s8 + $0x68] sm:$0xff] %v834_v14  ;;  %v812_v19 = vmul.f32 %v1320_v54, %v650_v11  ;;  %vm795_vm11 = vcmp.ge.f32.partialorder %v768_v15, 0.0  ;;  %v820_v20 = vmul.f32 %v1320_v54, %v768_v15  ;;  %vm788_vm12 = vcmp.ge.f32.partialorder %v652_v16, 0.0 }
 0x18f   : > { %v813_v1 = vmul.f32 %v1320_v54, %v652_v16  ;;  %v835_v52 = vsel %vm786_vm9, %v753_v10, %v811_v51  ;;  %v763_v22 = vadd.f32 %v762_v18, %v1317_v53 }
 0x190   : > { %v836_v21 = vsel %vm787_vm10, %v650_v11, %v812_v19  ;;  %859 = vst [vmem:[%s1327_s8 + $0x70] sm:$0xff] %v835_v52  ;;  %v844_v23 = vsel %vm795_vm11, %v768_v15, %v820_v20 }
 0x191   : > { %860 = vst [vmem:[%s1327_s8 + $0x78] sm:$0xff] %v836_v21  ;;  %v837_v24 = vsel %vm788_vm12, %v652_v16, %v813_v1  ;;  %868 = vst [vmem:[%s1327_s8 + $0xb8] sm:$0xff] %v844_v23  ;;  %vm792_vm13 = vcmp.ge.f32.partialorder %v763_v22, 0.0  ;;  %v817_v25 = vmul.f32 %v1320_v54, %v763_v22 }
 0x192   : > { %861 = vst [vmem:[%s1327_s8 + $0x80] sm:$0xff] %v837_v24 }
 0x193   : > { %v841_v26 = vsel %vm792_vm13, %v763_v22, %v817_v25 }
 0x194   : > { %865 = vst [vmem:[%s1327_s8 + $0xa0] sm:$0xff] %v841_v26 }
 0x195 PF: > { %s15_s19 = sadd.s32 1, %s1087_s19   ;;  %s1414_s17 = smov %s1083_s18 }
 0x196   : > { %p12_p5 = scmp.ge.s32.totalorder %s15_s19, 4   ;;  %s1415_s18 = smov %s1417_s3 }
 0x198   :  { %14 = sbr.rel (!%p12_p5) target bundleno = 2 (0x2), region = 86 }

</bundles_post_ra>
